<compile_context>
chip_gen: v6e
topology: v6e:2x2x1
jax: 0.10.0
libtpu: 0.0.40
codegen_flags: <defaults>
</compile_context>

<pallas_src>
import numpy as np
import jax
import jax.numpy as jnp
from jax.experimental import pallas as pl
from jax.experimental.pallas import tpu as pltpu


def _round_up(x: int, m: int) -> int:
    return ((x + m - 1) // m) * m


def _bilinear_matrix(in_size: int, out_size: int) -> np.ndarray:
    """Row-interpolation matrix matching torch/kornia bilinear resize (align_corners=False)."""
    dst = np.arange(out_size, dtype=np.float64)
    src = (dst + 0.5) * (in_size / out_size) - 0.5
    src = np.clip(src, 0.0, in_size - 1)
    i0 = np.floor(src).astype(np.int64)
    i1 = np.minimum(i0 + 1, in_size - 1)
    frac = src - i0
    m = np.zeros((out_size, in_size), dtype=np.float64)
    m[np.arange(out_size), i0] += 1.0 - frac
    m[np.arange(out_size), i1] += frac
    return m


def _choose_planes_per_step(n_planes, h, w, sr, sc, budget_bytes=16 << 20, cap=16):
    """Largest divisor B of n_planes whose per-step working set fits the VMEM budget."""
    # double-buffered uint8 input + f32 output, plus stage-1/stage-2 f32 temporaries
    per_plane = 2 * (h * w + sr * sc * 4) + h * sc * 4 + sr * sc * 4
    b_max = max(1, min(cap, budget_bytes // max(per_plane, 1)))
    if n_planes >= 2:
        # Keep at least 2 grid steps so the "parallel" axis can shard across v7x's 2 TensorCores.
        b_max = min(b_max, max(1, n_planes // 2))
    for b in range(min(b_max, n_planes), 0, -1):
        if n_planes % b == 0:
            return b
    return 1


def _aug_kernel(x_ref, wh_ref, wwt_ref, scale_ref, bias_ref, o_ref):
    # x_ref:     (B, H, W)   uint8 (VMEM)
    # wh_ref:    (Sr, H)     compute dtype (VMEM)
    # wwt_ref:   (W, Sc)     compute dtype (VMEM, 1/255 folded in)
    # scale_ref: (P,) f32 (SMEM)   bias_ref: (P,) f32 (SMEM)   -- per-plane 1/std and -mean/std
    # o_ref:     (B, Sr, Sc) f32 (VMEM)
    B, H, W = x_ref.shape
    cdt = wh_ref.dtype

    # Cast uint8 -> compute dtype inside the kernel (HBM->VMEM traffic stays 1 byte/pixel).
    x = x_ref[...]
    if jnp.issubdtype(x.dtype, jnp.integer):
        x = x.astype(jnp.int32)       # zero-extend; pixel values <= 255 are exact in bf16/f32
    x = x.astype(cdt)                 # (B, H, W)

    # Stage 1: contract W first -> one big, well-shaped MXU matmul covering all B planes.
    t = jnp.dot(x.reshape(B * H, W), wwt_ref[...],
                preferred_element_type=jnp.float32)                # (B*H, Sc), f32 accumulate
    t = t.astype(cdt)

    wh = wh_ref[...]                                               # (Sr, H)
    base = pl.program_id(0) * B
    # Stage 2 + fused normalize, per plane (B is small & static -> unrolled Python loop).
    for b in range(B):
        y = jnp.dot(wh, t[b * H:(b + 1) * H],
                    preferred_element_type=jnp.float32)            # (Sr, Sc) f32
        o_ref[b] = y * scale_ref[base + b] + bias_ref[base + b]


class DataAugmentationPallas:
    """Deterministic forward path of the PyTorch DataAugmentation module."""
    # TODO(synk): the random=True branch (Kornia RandAugment / RandomCrop /
    # RandomHorizontalFlip, sampled per call) has no clean deterministic Pallas
    # equivalent and is not implemented.

    def __init__(self, inp_size, mean, std, preprocess_size=256,
                 compute_dtype=jnp.bfloat16):
        self.inp_size = int(inp_size)
        self.pre = int(preprocess_size)
        self.mean = np.asarray(mean, dtype=np.float32)
        self.std = np.asarray(std, dtype=np.float32)
        self.compute_dtype = compute_dtype

    def __call__(self, x):
        n, c, h, w = x.shape
        s, pre, cdt = self.inp_size, self.pre, self.compute_dtype

        # Pad the output tile: rows to a multiple of 8 (sublanes), cols to a multiple of 128
        # (lanes) so vector stores stay unmasked; extra rows/cols are sliced off afterwards.
        sr = _round_up(s, 8)
        sc = _round_up(s, 128)

        # Resize matrices for the (pre x pre) preprocess with the CenterCrop window folded in
        # (only rows/cols that survive the crop are computed). 1/255 folded into the W weights.
        top = (pre - s) // 2
        left = (pre - s) // 2
        mh = _bilinear_matrix(h, pre)[top:top + s, :]               # (s, h)
        mw = _bilinear_matrix(w, pre)[left:left + s, :]             # (s, w)
        mh_p = np.zeros((sr, h), dtype=np.float64); mh_p[:s] = mh
        mw_p = np.zeros((sc, w), dtype=np.float64); mw_p[:s] = mw
        wh = jnp.asarray(mh_p, dtype=cdt)                           # (sr, h)
        wwt = jnp.asarray(mw_p.T / 255.0, dtype=cdt)                # (w, sc), x/255 folded here

        # Per-plane normalization constants -> SMEM scalars (no tiny per-step VMEM DMAs).
        num_planes = n * c
        istd = 1.0 / self.std
        scale = jnp.asarray(np.tile(istd, n), jnp.float32)          # (n*c,)
        bias = jnp.asarray(np.tile(-self.mean * istd, n), jnp.float32)

        x_flat = x.reshape(num_planes, h, w)                        # free reshape, stays uint8

        # Batch B planes per grid step so each step is a large, pipeline-friendly tile.
        # TODO(synk): for planes so large a single uint8 plane exceeds the VMEM budget, a
        # K-tiled grid axis over H with an (S, W) accumulator would be needed.
        bpp = _choose_planes_per_step(num_planes, h, w, sr, sc)
        grid = (num_planes // bpp,)

        out = pl.pallas_call(
            _aug_kernel,
            out_shape=jax.ShapeDtypeStruct((num_planes, sr, sc), jnp.float32),
            grid_spec=pltpu.PrefetchScalarGridSpec(
                num_scalar_prefetch=0,
                grid=grid,
                in_specs=[
                    pl.BlockSpec((bpp, h, w), lambda i: (i, 0, 0)),       # uint8 image planes
                    pl.BlockSpec((sr, h), lambda i: (0, 0)),              # Wh (shared)
                    pl.BlockSpec((w, sc), lambda i: (0, 0)),              # Ww^T / 255 (shared)
                    pl.BlockSpec(memory_space=pltpu.MemorySpace.SMEM),    # per-plane 1/std
                    pl.BlockSpec(memory_space=pltpu.MemorySpace.SMEM),    # per-plane -mean/std
                ],
                out_specs=pl.BlockSpec((bpp, sr, sc), lambda i: (i, 0, 0)),
            ),
            compiler_params=pltpu.CompilerParams(
                dimension_semantics=("parallel",),
                vmem_limit_bytes=48 * 1024 * 1024,
            ),
        )(x_flat, wh, wwt, scale, bias)

        if (sr, sc) != (s, s):
            out = out[:, :s, :s]
        return out.reshape(n, c, s, s)


if __name__ == "__main__":
    key = jax.random.PRNGKey(0)
    N, C, H, W = 2, 3, 16, 16
    x = jax.random.randint(key, (N, C, H, W), 0, 256, dtype=jnp.int32).astype(jnp.uint8)

    inp_size = 128
    mean = (0.485, 0.456, 0.406)
    std = (0.229, 0.224, 0.225)

    # Pure-numpy reference (float64): resize(/255) -> center-crop -> normalize.
    top = (256 - inp_size) // 2
    mh_ref = _bilinear_matrix(H, 256)[top:top + inp_size, :]
    mw_ref = _bilinear_matrix(W, 256)[top:top + inp_size, :]
    xf = np.asarray(x, dtype=np.float64) / 255.0
    ref = np.einsum("sh,nchw,tw->ncst", mh_ref, xf, mw_ref)
    ref = (ref - np.asarray(mean).reshape(1, C, 1, 1)) / np.asarray(std).reshape(1, C, 1, 1)

    # Default path (bf16 MXU operands, f32 accumulation). bf16-rounded bilinear weights bound
    # the absolute error at a few 1e-2 here (2^-9 relative, amplified by 1/std) -> loose atol.
    aug = DataAugmentationPallas(inp_size, mean, std, preprocess_size=256)
    out = jax.block_until_ready(aug(x))
    assert out.shape == (N, C, inp_size, inp_size), out.shape
    np.testing.assert_allclose(np.asarray(out), ref, rtol=0.0, atol=1e-1)

    # Exact path (f32 operands) verifies the resize/crop/normalize algebra tightly.
    aug_f32 = DataAugmentationPallas(inp_size, mean, std, preprocess_size=256,
                                     compute_dtype=jnp.float32)
    out_f32 = jax.block_until_ready(aug_f32(x))
    np.testing.assert_allclose(np.asarray(out_f32), ref, rtol=1e-4, atol=1e-4)

    print("KERNEL_OK")
</pallas_src>

<mosaic_0001>
module attributes {stable_mosaic.version = 11 : i64} {
  func.func @_aug_kernel(%arg0: i32, %arg1: memref<3x16x16xi8, #tpu.memory_space<vmem>>, %arg2: memref<128x16xbf16, #tpu.memory_space<vmem>>, %arg3: memref<16x128xbf16, #tpu.memory_space<vmem>>, %arg4: memref<6xf32, #tpu.memory_space<smem>>, %arg5: memref<6xf32, #tpu.memory_space<smem>>, %arg6: memref<3x128x128xf32, #tpu.memory_space<vmem>>) attributes {dimension_semantics = [#tpu.dimension_semantics<parallel>], iteration_bounds = array<i64: 2>, scalar_prefetch = 0 : i64, scratch_operands = 0 : i64, tpu.core_type = #tpu.core_type<tc>, window_params = [{transform_indices = @transform_0, window_bounds = array<i64: 3, 16, 16>}, {pipeline_mode = #tpu.pipeline_mode<synchronous>, transform_indices = @transform_1, window_bounds = array<i64: 128, 16>}, {pipeline_mode = #tpu.pipeline_mode<synchronous>, transform_indices = @transform_2, window_bounds = array<i64: 16, 128>}, {transform_indices = @transform_3, window_bounds = array<i64: 6>}, {transform_indices = @transform_4, window_bounds = array<i64: 6>}, {transform_indices = @transform_5, window_bounds = array<i64: 3, 128, 128>}]} {
    %c0 = arith.constant 0 : index
    %c0_0 = arith.constant 0 : index
    %c0_1 = arith.constant 0 : index
    %0 = vector.load %arg1[%c0, %c0_0, %c0_1] : memref<3x16x16xi8, #tpu.memory_space<vmem>>, vector<3x16x16xi8>
    %1 = arith.extui %0 : vector<3x16x16xi8> to vector<3x16x16xi32>
    %2 = arith.sitofp %1 : vector<3x16x16xi32> to vector<3x16x16xbf16>
    %3 = vector.shape_cast %2 : vector<3x16x16xbf16> to vector<48x16xbf16>
    %c0_2 = arith.constant 0 : index
    %c0_3 = arith.constant 0 : index
    %4 = vector.load %arg3[%c0_2, %c0_3] : memref<16x128xbf16, #tpu.memory_space<vmem>>, vector<16x128xbf16>
    %cst = arith.constant dense<0.000000e+00> : vector<48x128xf32>
    %5 = tpu.matmul %3, %4, %cst {dimension_numbers = #tpu.dot_dimension_numbers<[1], [0], [0], [1], [0, 0, 1, 1], [], []>} : vector<48x16xbf16>, vector<16x128xbf16>, vector<48x128xf32> -> vector<48x128xf32>
    %6 = arith.truncf %5 : vector<48x128xf32> to vector<48x128xbf16>
    %c0_4 = arith.constant 0 : index
    %c0_5 = arith.constant 0 : index
    %7 = vector.load %arg2[%c0_4, %c0_5] : memref<128x16xbf16, #tpu.memory_space<vmem>>, vector<128x16xbf16>
    %c3_i32 = arith.constant 3 : i32
    %8 = arith.muli %arg0, %c3_i32 : i32
    %9 = vector.extract_strided_slice %6 {offsets = [0, 0], sizes = [16, 128], strides = [1, 1]} : vector<48x128xbf16> to vector<16x128xbf16>
    %cst_6 = arith.constant dense<0.000000e+00> : vector<128x128xf32>
    %10 = tpu.matmul %7, %9, %cst_6 {dimension_numbers = #tpu.dot_dimension_numbers<[1], [0], [0], [1], [0, 0, 1, 1], [], []>} : vector<128x16xbf16>, vector<16x128xbf16>, vector<128x128xf32> -> vector<128x128xf32>
    %c0_i32 = arith.constant 0 : i32
    %11 = arith.addi %8, %c0_i32 : i32
    %12 = arith.index_cast %11 : i32 to index
    %13 = memref.load %arg4[%12] : memref<6xf32, #tpu.memory_space<smem>>
    %14 = vector.broadcast %13 : f32 to vector<128x128xf32>
    %15 = arith.mulf %10, %14 : vector<128x128xf32>
    %c0_i32_7 = arith.constant 0 : i32
    %16 = arith.addi %8, %c0_i32_7 : i32
    %17 = arith.index_cast %16 : i32 to index
    %18 = memref.load %arg5[%17] : memref<6xf32, #tpu.memory_space<smem>>
    %19 = vector.broadcast %18 : f32 to vector<128x128xf32>
    %20 = arith.addf %15, %19 : vector<128x128xf32>
    %c0_8 = arith.constant 0 : index
    %c0_9 = arith.constant 0 : index
    %c0_10 = arith.constant 0 : index
    %21 = vector.load %arg6[%c0_8, %c0_9, %c0_10] : memref<3x128x128xf32, #tpu.memory_space<vmem>>, vector<1x128x128xf32>
    %22 = vector.shape_cast %21 : vector<1x128x128xf32> to vector<128x128xf32>
    %23 = vector.shape_cast %20 : vector<128x128xf32> to vector<1x128x128xf32>
    tpu.vector_store %arg6[%c0_8, %c0_9, %c0_10], %23 {strides = array<i32>} : memref<3x128x128xf32, #tpu.memory_space<vmem>>, vector<1x128x128xf32>,
    %24 = vector.extract_strided_slice %6 {offsets = [16, 0], sizes = [16, 128], strides = [1, 1]} : vector<48x128xbf16> to vector<16x128xbf16>
    %cst_11 = arith.constant dense<0.000000e+00> : vector<128x128xf32>
    %25 = tpu.matmul %7, %24, %cst_11 {dimension_numbers = #tpu.dot_dimension_numbers<[1], [0], [0], [1], [0, 0, 1, 1], [], []>} : vector<128x16xbf16>, vector<16x128xbf16>, vector<128x128xf32> -> vector<128x128xf32>
    %c1_i32 = arith.constant 1 : i32
    %26 = arith.addi %8, %c1_i32 : i32
    %27 = arith.index_cast %26 : i32 to index
    %28 = memref.load %arg4[%27] : memref<6xf32, #tpu.memory_space<smem>>
    %29 = vector.broadcast %28 : f32 to vector<128x128xf32>
    %30 = arith.mulf %25, %29 : vector<128x128xf32>
    %c1_i32_12 = arith.constant 1 : i32
    %31 = arith.addi %8, %c1_i32_12 : i32
    %32 = arith.index_cast %31 : i32 to index
    %33 = memref.load %arg5[%32] : memref<6xf32, #tpu.memory_space<smem>>
    %34 = vector.broadcast %33 : f32 to vector<128x128xf32>
    %35 = arith.addf %30, %34 : vector<128x128xf32>
    %c1 = arith.constant 1 : index
    %c0_13 = arith.constant 0 : index
    %c0_14 = arith.constant 0 : index
    %36 = vector.load %arg6[%c1, %c0_13, %c0_14] : memref<3x128x128xf32, #tpu.memory_space<vmem>>, vector<1x128x128xf32>
    %37 = vector.shape_cast %36 : vector<1x128x128xf32> to vector<128x128xf32>
    %38 = vector.shape_cast %35 : vector<128x128xf32> to vector<1x128x128xf32>
    tpu.vector_store %arg6[%c1, %c0_13, %c0_14], %38 {strides = array<i32>} : memref<3x128x128xf32, #tpu.memory_space<vmem>>, vector<1x128x128xf32>,
    %39 = vector.extract_strided_slice %6 {offsets = [32, 0], sizes = [16, 128], strides = [1, 1]} : vector<48x128xbf16> to vector<16x128xbf16>
    %cst_15 = arith.constant dense<0.000000e+00> : vector<128x128xf32>
    %40 = tpu.matmul %7, %39, %cst_15 {dimension_numbers = #tpu.dot_dimension_numbers<[1], [0], [0], [1], [0, 0, 1, 1], [], []>} : vector<128x16xbf16>, vector<16x128xbf16>, vector<128x128xf32> -> vector<128x128xf32>
    %c2_i32 = arith.constant 2 : i32
    %41 = arith.addi %8, %c2_i32 : i32
    %42 = arith.index_cast %41 : i32 to index
    %43 = memref.load %arg4[%42] : memref<6xf32, #tpu.memory_space<smem>>
    %44 = vector.broadcast %43 : f32 to vector<128x128xf32>
    %45 = arith.mulf %40, %44 : vector<128x128xf32>
    %c2_i32_16 = arith.constant 2 : i32
    %46 = arith.addi %8, %c2_i32_16 : i32
    %47 = arith.index_cast %46 : i32 to index
    %48 = memref.load %arg5[%47] : memref<6xf32, #tpu.memory_space<smem>>
    %49 = vector.broadcast %48 : f32 to vector<128x128xf32>
    %50 = arith.addf %45, %49 : vector<128x128xf32>
    %c2 = arith.constant 2 : index
    %c0_17 = arith.constant 0 : index
    %c0_18 = arith.constant 0 : index
    %51 = vector.load %arg6[%c2, %c0_17, %c0_18] : memref<3x128x128xf32, #tpu.memory_space<vmem>>, vector<1x128x128xf32>
    %52 = vector.shape_cast %51 : vector<1x128x128xf32> to vector<128x128xf32>
    %53 = vector.shape_cast %50 : vector<128x128xf32> to vector<1x128x128xf32>
    tpu.vector_store %arg6[%c2, %c0_17, %c0_18], %53 {strides = array<i32>} : memref<3x128x128xf32, #tpu.memory_space<vmem>>, vector<1x128x128xf32>,
    return
  }
  func.func @transform_0(%arg0: i32) -> (i32, i32, i32) {
    %c0_i32 = arith.constant 0 : i32
    %c0_i32_0 = arith.constant 0 : i32
    %c0_i32_1 = arith.constant 0 : i32
    return %arg0, %c0_i32, %c0_i32_0 : i32, i32, i32
  }
  func.func @transform_1(%arg0: i32) -> (i32, i32) {
    %c0_i32 = arith.constant 0 : i32
    %c0_i32_0 = arith.constant 0 : i32
    %c0_i32_1 = arith.constant 0 : i32
    return %c0_i32, %c0_i32_0 : i32, i32
  }
  func.func @transform_2(%arg0: i32) -> (i32, i32) {
    %c0_i32 = arith.constant 0 : i32
    %c0_i32_0 = arith.constant 0 : i32
    %c0_i32_1 = arith.constant 0 : i32
    return %c0_i32, %c0_i32_0 : i32, i32
  }
  func.func @transform_3(%arg0: i32) -> i32 {
    %c0_i32 = arith.constant 0 : i32
    %c0_i32_0 = arith.constant 0 : i32
    return %c0_i32 : i32
  }
  func.func @transform_4(%arg0: i32) -> i32 {
    %c0_i32 = arith.constant 0 : i32
    %c0_i32_0 = arith.constant 0 : i32
    return %c0_i32 : i32
  }
  func.func @transform_5(%arg0: i32) -> (i32, i32, i32) {
    %c0_i32 = arith.constant 0 : i32
    %c0_i32_0 = arith.constant 0 : i32
    %c0_i32_1 = arith.constant 0 : i32
    return %arg0, %c0_i32, %c0_i32_0 : i32, i32, i32
  }
}

</mosaic_0001>

<bundles_post_ra>
// kernel: tpu_custom_call.1
= control target key start
LH: loop header
LB: loop body
LE: loop exit
PB: predicated region body
PF: predicated region fallthrough
CT: control target
= control target key end

     0   :  { %10 = vsyncpa [#allocation4], 0  ;;  %s1762_s0 = inlined_call_operand.vmem [shape: u8[6,16,16], index: 0, kind: input, shape index: {}]   ;;  %s1763_s1 = inlined_call_operand.vmem [shape: bf16[128,16], index: 1, kind: input, shape index: {}]   ;;  %s1764_s2 = inlined_call_operand.vmem [shape: bf16[16,128], index: 2, kind: input, shape index: {}]   ;;  %s1765_s3 = inlined_call_operand.vmem [shape: f32[6], index: 3, kind: input, shape index: {}]   ;;  %s1766_s4 = inlined_call_operand.vmem [shape: f32[6], index: 4, kind: input, shape index: {}]   ;;  %s1767_s5 = inlined_call_operand.hbm [shape: f32[6,128,128], index: 5, kind: output, shape index: {}]  }
   0x1   :  { %11 = vsyncpa [#allocation6], 0 }
   0x2   :  { %12 = vsyncpa [#allocation3], 0 }
   0x3   :  { %14 = vsyncpa [#allocation3 + $0x1], 0  ;;  %s1392_s18 = smov 0   ;;  %s1394_s19 = smov 0  }
   0x4   :  { %s1396_s20 = smov 0   ;;  %s1398_s21 = smov 0  }
   0x5 LB: > { %s1413_s22 = sadd.s32 4294967295, %s1353_s21   ;;  %s993_s23 = sadd.s32 4294967294, %s1353_s21   ;;  %s1353_s21 = sphi %s1398_s21, %s1785_s21   ;;  %s1349_s20 = sphi %s1396_s20, %s1784_s20   ;;  %s1345_s19 = sphi %s1394_s19, %s1783_s19   ;;  %s1341_s18 = sphi %s1392_s18, %s1782_s18  }
   0x6   : > { %s1417_s24 = sadd.s32 1, %s1353_s21   ;;  %s137_s25 = sadd.s32 1, %s1349_s20 }
   0x7   : > { %s134_s26 = ssub.s32 %s1353_s21, %s1417_s24  ;;  %p147_p0 = scmp.ne.s32.totalorder %s1349_s20, %s1345_s19 }
   0x8   : > { %p135_p1 = scmp.eq.s32.totalorder %s134_s26, 0  ;;  %p148_p2 = scmp.eq.s32.totalorder %s1413_s22, 1 }
   0x9   : > { %p153_p3 = scmp.ne.s32.totalorder %s1345_s19, %s1341_s18  ;;  %p154_p4 = scmp.eq.s32.totalorder %s993_s23, 1 }
   0xa   : > { %s1428_s27 = scalar_select %p135_p1, %s1349_s20, %s137_s25  }
   0xb   : > { %p1430_p5 = por %p148_p2, %p147_p0  ;;  %p1434_p6 = por %p154_p4, %p153_p3 }
   0xc   : > { %p994_p7 = scmp.ge.s32.totalorder %s1353_s21, 1  ;;  %p161_p8 = scmp.lt.s32.totalorder %s1353_s21, 3 }
   0xd   : > { %s1771_s28 = scalar_select %p1430_p5, 1, 0 }
   0xe   : > { %s1772_s29 = scalar_select %p1434_p6, 1, 0 }
   0xf   : > { %p1768_p9 = scmp.eq.s32.totalorder %s1413_s22, 0  ;;  %p1441_p10 = pnand %p994_p7, %p161_p8 }
  0x10   : > { %s180_s8 = sshll.u32 %s1765_s3, 4  ;;  %s191_s11 = sshll.u32 %s1766_s4, 4  ;;  %s181_s8 = int_to_ptr.vmem [resolvable:$true] %s180_s8  ;;  %s192_s11 = int_to_ptr.vmem [resolvable:$true] %s191_s11 }
  0x11   : > { %s1773_s30 = scalar_select %p1441_p10, 1, 0 }
  0x12   : > { %p1192_p11 = pneg %p1441_p10  ;;  %s1255_s13 = scalar_lea.vmem %s181_s8, 16 }
  0x13   : > { %p1256_p13 = scmp.ne.s32.totalorder %s181_s8, %s1255_s13  ;;  %p1263_p3 = scmp.lt.s32.totalorder %s181_s8, %s181_s8 }
  0x14   : > { %p1455_p12 = pnand %p1768_p9, %p1192_p11  ;;  %p1264_p4 = scmp.lt.s32.totalorder %s1255_s13, %s1255_s13 }
  0x16   : > { %p1257_p0 = pneg %p1455_p12  ;;  %p1265_p7 = por %p1264_p4, %p1263_p3 }
  0x18   : > { %p1258_p1 = pnand %p1257_p0, %p1256_p13 }
  0x1a   : > { %p1259_p2 = pneg %p1258_p1 }
  0x1c   : > { %p1266_p8 = pnand %p1265_p7, %p1259_p2 }
  0x1e   : > { %1269 = shalt.err (!%p1266_p8)
}
  0x1f   : > { %s1355_s14 = smov [#allocation2]   ;;  %s1270_s15 = scalar_lea.vmem %s192_s11, 16 }
  0x20   : > { %1195 = dma.vmem_to_smem (!%p1455_p12), %s181_s8, 16, %s1355_s14, [#allocation4]  }
  0x21   : > { %p1271_p11 = scmp.ne.s32.totalorder %s192_s11, %s1270_s15  ;;  %p1278_p5 = scmp.lt.s32.totalorder %s192_s11, %s192_s11 }
  0x22   : > { %p1279_p10 = scmp.lt.s32.totalorder %s1270_s15, %s1270_s15 }
  0x23   : > { %p1273_p9 = pnand %p1271_p11, %p1257_p0 }
  0x24   : > { %p1280_p13 = por %p1279_p10, %p1278_p5 }
  0x25   : > { %p1274_p6 = pneg %p1273_p9 }
  0x27   : > { %p1281_p1 = pnand %p1280_p13, %p1274_p6 }
  0x29   : > { %1284 = shalt.err (!%p1281_p1)
}
  0x2a   : > { %s1356_s16 = smov [#allocation5]   ;;  %p1775_p2 = scmp.ne.s32.totalorder %s1773_s30, 0 }
  0x2b   : > { %1198 = dma.vmem_to_smem (!%p1455_p12), %s192_s11, 16, %s1356_s16, [#allocation6]  }
  0x2c   : > { %214 = sbr.rel (%p1775_p2) target bundleno = 545 (0x221), region = 40  ;;  %p1776_p3 = scmp.eq.s32.totalorder (!%p1775_p2), %s1413_s22, 0 }
  0x31   : > { %1328 = dma.done.wait (%p1776_p3), [#allocation4], 16   ;;  %p1777_p4 = pmov %p1776_p3 }
  0x32   : > { %p1778_p9 = pmov %p1776_p3 }
  0x33   : > { %1330 = vsyncadd (%p1777_p4), [#allocation4], 4294967280 }
  0x34   : > { %1332 = dma.done.wait (%p1778_p9), [#allocation6], 16   ;;  %p1779_p5 = pmov %p1776_p3 }
  0x36   : > { %1334 = vsyncadd (%p1779_p5), [#allocation6], 4294967280 }
  0x37   : > { %224 = sfence }
  0x38   : > { %v1246_v0 = vld [vmem:[%s1764_s2] sm:$0xff]   ;;  %v1357_v1 = vmov 0.0   ;;  %s1479_s25 = smul.u32 3, %s1413_s22  ;;  %vm1358_vm0 = vmmov 0   ;;  %vm292_vm1 = vcmask 130048   ;;  %v1248_v23 = vld [vmem:[%s1763_s1 + $0x8] sm:$0xff]  }
  0x39   : > { %1113 = vmatprep.subr.bf16.mxu0 %v1357_v1  ;;  %1115 = vmatprep.mubr.msk.bf16.mxu0 %vm1358_vm0, %v1357_v1  ;;  %v1247_v17 = vld [vmem:[%s1763_s1] sm:$0xff]   ;;  %v1249_v25 = vld [vmem:[%s1763_s1 + $0x10] sm:$0xff]   ;;  %v1250_v30 = vld [vmem:[%s1763_s1 + $0x18] sm:$0xff]   ;;  %s245_s12 = sand.u32 1, %s1345_s19   ;;  %p1780_p12 = scmp.ne.s32.totalorder %s1771_s28, 0 }
  0x3a   : > { %1114 = vmatpush3.bf16.msra.mxu0 %v1246_v0  ;;  %p249_p6 = scmp.lt.s32.totalorder %s1479_s25, 5  ;;  %1129 = vmatprep.mubr.msk.bf16.mxu1 %vm292_vm1, %v1247_v17  ;;  %v1251_v32 = vld [vmem:[%s1763_s1 + $0x20] sm:$0xff]   ;;  %v1252_v37 = vld [vmem:[%s1763_s1 + $0x28] sm:$0xff]   ;;  %v1253_v38 = vld [vmem:[%s1763_s1 + $0x30] sm:$0xff]   ;;  %s540_s10 = sld [smem:[#allocation2 + %s1479_s25]] }
  0x3b   : > { %v1254_v39 = vld [vmem:[%s1763_s1 + $0x38] sm:$0xff]   ;;  %s558_s11 = sld [smem:[#allocation5 + %s1479_s25]]  ;;  %s689_s13 = sadd.s32 1, %s1479_s25 }
  0x3c   : > { %s250_s26 = scalar_select %p249_p6, %s1479_s25, 5 }
  0x3d   : > { %s1181_s14 = smul.u32 384, %s245_s12  ;;  %s690_s15 = sld [smem:[#allocation2 + %s689_s13]] }
  0x3e   : > { %s1078_s30 = sshll.u32 %s250_s26, 2  ;;  %s708_s16 = sld [smem:[#allocation5 + %s689_s13]] }
  0x3f   : > { %s253_s8 = scalar_lea.vmem %s1762_s0, %s1078_s30  ;;  %s1553_s17 = scalar_lea.vmem [#allocation7], %s1181_s14 }
  0x40   : > { %v257_v2 = vld [vmem:[%s253_s8] sm:$0x3]  ;;  %v258_v3 = vld [vmem:[%s253_s8 + $0x2] sm:$0x3]  ;;  %v259_v6 = vld [vmem:[%s253_s8 + $0x4] sm:$0x3]  ;;  %v1546_v40 = vstv %s540_s10 }
  0x41   : > { %v263_v4 = vunpack.c.l.u8.bf16 %v257_v2  ;;  %v264_v5 = vunpack.c.l.u8.bf16 %v258_v3  ;;  %v260_v7 = vld [vmem:[%s253_s8 + $0x6] sm:$0x3]  ;;  %v265_v9 = vunpack.c.l.u8.bf16 %v259_v6  ;;  %v261_v12 = vld [vmem:[%s253_s8 + $0x8] sm:$0x3]  ;;  %v262_v13 = vld [vmem:[%s253_s8 + $0xa] sm:$0x3]  ;;  %v1548_v42 = vstv %s558_s11 }
  0x42   : > { %v266_v10 = vunpack.c.l.u8.bf16 %v260_v7  ;;  %v267_v14 = vunpack.c.l.u8.bf16 %v261_v12  ;;  %v268_v15 = vunpack.c.l.u8.bf16 %v262_v13  ;;  %s840_s23 = sadd.s32 2, %s1479_s25  ;;  %s1081_s30 = smul.u32 6144, %s1413_s22 }
  0x43   : > { %v1003_v8 = vcombine.low %v263_v4, %v264_v5  ;;  %v1558_v51 = vstv %s690_s15  ;;  %s1605_s25 = sld [smem:[#allocation2 + %s840_s23]]  ;;  %s909_s6 = sshll.u32 %s1553_s17, 4  ;;  %s1715_s6 = int_to_ptr.vmem [resolvable:$true] %s909_s6 }
  0x44   : > { %v1004_v11 = vcombine.low %v265_v9, %v266_v10  ;;  %v1005_v16 = vcombine.low %v267_v14, %v268_v15  ;;  %v1563_v56 = vstv %s708_s16  ;;  %s1613_s26 = sld [smem:[#allocation5 + %s840_s23]]  ;;  %s1713_s9 = scalar_lea.hbm %s1767_s5, %s1081_s30 }
  0x45   : > { %1116 = vmatmul.mubr.msk.bf16.vlgmr.msra.gmra.mxu0 %vm292_vm1, %v1003_v8  ;;  %s1722_s22 = scalar_lea.sflag [#allocation3], %s245_s12  ;;  %s1285_s10 = scalar_lea.vmem %s1715_s6, 6144 }
  0x46   : > { %1119 = vmatprep.mubr.msk.bf16.mxu0 %vm1358_vm0, %v1357_v1  ;;  %p1286_p10 = scmp.ne.s32.totalorder %s1715_s6, %s1285_s10  ;;  %s1359_s11 = smov [#allocation7]  }
  0x47   : > { %s1289_s13 = sshll.u32 %s1359_s11, 4  ;;  %s1290_s13 = int_to_ptr.vmem [resolvable:$false] %s1289_s13 }
  0x48   : > { %p1287_p0 = pnand %p1286_p10, %p1780_p12  ;;  %s1291_s14 = scalar_lea.vmem %s1290_s13, 12288 }
  0x49   : > { %p1292_p8 = scmp.lt.s32.totalorder %s1715_s6, %s1290_s13  ;;  %p1293_p11 = scmp.lt.s32.totalorder %s1291_s14, %s1285_s10 }
  0x4a   : > { %p1288_p7 = pneg %p1287_p0 }
  0x4b   : > { %p1294_p13 = por %p1293_p11, %p1292_p8 }
  0x4d   : > { %1120 = vmatmul.mubr.msk.bf16.gmra.mxu0 %vm292_vm1, %v1004_v11  ;;  %p1295_p1 = pnand %p1294_p13, %p1288_p7 }
  0x4e   : > { %1123 = vmatprep.mubr.msk.bf16.mxu0 %vm1358_vm0, %v1357_v1 }
  0x55   : > { %1124 = vmatmul.mubr.msk.bf16.gmra.mxu0 %vm292_vm1, %v1005_v16 }
  0x56   : > { %1147 = vmatprep.mubr.msk.bf16.mxu0 %vm292_vm1, %v1247_v17 }
 0x105   : > { %v336_v18 = vpop.f32.mrf.mxu0 }
 0x107   : > { %v1117_v19 = vpop.f32.mrf.mxu0 }
 0x109   : > { %v339_v20 = vpop.f32.mrf.mxu0 }
 0x10a   : > { %v359_v21 = vpack.c.bf16 %v339_v20, %v336_v18 }
 0x10b   : > { %v1118_v22 = vpop.f32.mrf.mxu0 }
 0x10c   : > { %1127 = vmatprep.subr.bf16.mxu1 %v359_v21 }
 0x10d   : > { %v344_v24 = vpop.f32.mrf.mxu0  ;;  %1128 = vmatpush3.bf16.msra.mxu1 %v359_v21 }
 0x10f   : > { %v1121_v26 = vpop.f32.mrf.mxu0 }
 0x110   : > { %1130 = vmatmul.mubr.msk.bf16.vlgmr.msra.gmra.mxu1 %vm292_vm1, %v1248_v23 }
 0x111   : > { %v347_v27 = vpop.f32.mrf.mxu0  ;;  %1133 = vmatprep.mubr.msk.bf16.mxu1 %vm292_vm1, %v1249_v25 }
 0x112   : > { %v360_v28 = vpack.c.bf16 %v347_v27, %v344_v24 }
 0x113   : > { %v1122_v29 = vpop.f32.mrf.mxu0 }
 0x114   : > { %1145 = vmatprep.subr.bf16.mxu0 %v360_v28 }
 0x115   : > { %v352_v31 = vpop.f32.mrf.mxu0  ;;  %1146 = vmatpush3.bf16.msra.mxu0 %v360_v28 }
 0x117   : > { %v1125_v33 = vpop.f32.mrf.mxu0 }
 0x118   : > { %1134 = vmatmul.mubr.msk.bf16.gmra.mxu1 %vm292_vm1, %v1250_v30  ;;  %1148 = vmatmul.mubr.msk.bf16.vlgmr.msra.gmra.mxu0 %vm292_vm1, %v1248_v23 }
 0x119   : > { %v355_v34 = vpop.f32.mrf.mxu0  ;;  %1137 = vmatprep.mubr.msk.bf16.mxu1 %vm292_vm1, %v1251_v32  ;;  %1151 = vmatprep.mubr.msk.bf16.mxu0 %vm292_vm1, %v1249_v25 }
 0x11a   : > { %v361_v35 = vpack.c.bf16 %v355_v34, %v352_v31 }
 0x11b   : > { %v1126_v36 = vpop.f32.mrf.mxu0 }
 0x11c   : > { %1163 = vmatprep.subr.bf16.mxu1 %v361_v35 }
 0x11d   : > { %1164 = vmatpush3.bf16.msra.mxu1 %v361_v35 }
 0x120   : > { %1138 = vmatmul.mubr.msk.bf16.gmra.mxu1 %vm292_vm1, %v1252_v37  ;;  %1152 = vmatmul.mubr.msk.bf16.gmra.mxu0 %vm292_vm1, %v1250_v30 }
 0x121   : > { %1141 = vmatprep.mubr.msk.bf16.mxu1 %vm292_vm1, %v1253_v38  ;;  %1155 = vmatprep.mubr.msk.bf16.mxu0 %vm292_vm1, %v1251_v32 }
 0x128   : > { %1142 = vmatmul.mubr.msk.bf16.gmra.mxu1 %vm292_vm1, %v1254_v39  ;;  %1156 = vmatmul.mubr.msk.bf16.gmra.mxu0 %vm292_vm1, %v1252_v37 }
 0x129   : > { %1165 = vmatprep.mubr.msk.bf16.mxu1 %vm292_vm1, %v1247_v17  ;;  %1159 = vmatprep.mubr.msk.bf16.mxu0 %vm292_vm1, %v1253_v38 }
 0x130   : > { %1166 = vmatmul.mubr.msk.bf16.vlgmr.msra.gmra.mxu1 %vm292_vm1, %v1248_v23  ;;  %1160 = vmatmul.mubr.msk.bf16.gmra.mxu0 %vm292_vm1, %v1254_v39 }
 0x131   : > { %1169 = vmatprep.mubr.msk.bf16.mxu1 %vm292_vm1, %v1249_v25 }
 0x138   : > { %1170 = vmatmul.mubr.msk.bf16.gmra.mxu1 %vm292_vm1, %v1250_v30 }
 0x139   : > { %1173 = vmatprep.mubr.msk.bf16.mxu1 %vm292_vm1, %v1251_v32 }
 0x140   : > { %1174 = vmatmul.mubr.msk.bf16.gmra.mxu1 %vm292_vm1, %v1252_v37 }
 0x141   : > { %1177 = vmatprep.mubr.msk.bf16.mxu1 %vm292_vm1, %v1253_v38 }
 0x148   : > { %1178 = vmatmul.mubr.msk.bf16.gmra.mxu1 %vm292_vm1, %v1254_v39 }
 0x1d0   : > { %v1131_v41 = vpop.f32.mrf.mxu1 }
 0x1d1   : > { %v544_v43 = vmul.f32 %v1131_v41, %v1546_v40 }
 0x1d2   : > { %v477_v44 = vpop.f32.mrf.mxu1 }
 0x1d3   : > { %v562_v45 = vadd.f32 %v1548_v42, %v544_v43  ;;  %v542_v46 = vmul.f32 %v1546_v40, %v477_v44 }
 0x1d4   : > { %v1132_v47 = vpop.f32.mrf.mxu1 }
 0x1d5   : > { %578 = vst [vmem:[%s1553_s17 + $0x10] sm:$0xff] %v562_v45  ;;  %v560_v48 = vadd.f32 %v1548_v42, %v542_v46  ;;  %v545_v49 = vmul.f32 %v1132_v47, %v1546_v40 }
 0x1d6   : > { %v480_v50 = vpop.f32.mrf.mxu1 }
 0x1d7   : > { %576 = vst [vmem:[%s1553_s17] sm:$0xff] %v560_v48  ;;  %v563_v52 = vadd.f32 %v1548_v42, %v545_v49  ;;  %v543_v53 = vmul.f32 %v1546_v40, %v480_v50 }
 0x1d8   : > { %v1135_v54 = vpop.f32.mrf.mxu1  ;;  %v1149_v55 = vpop.f32.mrf.mxu0 }
 0x1d9   : > { %579 = vst [vmem:[%s1553_s17 + $0x18] sm:$0xff] %v563_v52  ;;  %v561_v57 = vadd.f32 %v1548_v42, %v543_v53  ;;  %v548_v58 = vmul.f32 %v1135_v54, %v1546_v40  ;;  %v694_v59 = vmul.f32 %v1149_v55, %v1558_v51 }
 0x1da   : > { %v493_v60 = vpop.f32.mrf.mxu1  ;;  %v626_v61 = vpop.f32.mrf.mxu0 }
 0x1db   : > { %577 = vst [vmem:[%s1553_s17 + $0x8] sm:$0xff] %v561_v57  ;;  %v566_v62 = vadd.f32 %v1548_v42, %v548_v58  ;;  %v546_v63 = vmul.f32 %v1546_v40, %v493_v60  ;;  %v712_v0 = vadd.f32 %v1563_v56, %v694_v59  ;;  %v692_v1 = vmul.f32 %v1558_v51, %v626_v61 }
 0x1dc   : > { %v1136_v2 = vpop.f32.mrf.mxu1  ;;  %v1150_v3 = vpop.f32.mrf.mxu0  ;;  %v1634_v61 = vstv %s1605_s25 }
 0x1dd   : > { %582 = vst [vmem:[%s1553_s17 + $0x30] sm:$0xff] %v566_v62  ;;  %v564_v4 = vadd.f32 %v1548_v42, %v546_v63  ;;  %v549_v5 = vmul.f32 %v1136_v2, %v1546_v40  ;;  %1036 = vst [vmem:[%s1553_s17 + $0x90] sm:$0xff] %v712_v0  ;;  %v710_v6 = vadd.f32 %v1563_v56, %v692_v1 }
 0x1de   : > { %v695_v7 = vmul.f32 %v1150_v3, %v1558_v51  ;;  %v496_v8 = vpop.f32.mrf.mxu1  ;;  %v629_v9 = vpop.f32.mrf.mxu0 }
 0x1df   : > { %580 = vst [vmem:[%s1553_s17 + $0x20] sm:$0xff] %v564_v4  ;;  %v567_v10 = vadd.f32 %v1548_v42, %v549_v5  ;;  %v547_v11 = vmul.f32 %v1546_v40, %v496_v8  ;;  %1034 = vst [vmem:[%s1553_s17 + $0x80] sm:$0xff] %v710_v6  ;;  %v693_v13 = vmul.f32 %v1558_v51, %v629_v9  ;;  %v1643_v4 = vstv %s1613_s26 }
 0x1e0   : > { %v713_v12 = vadd.f32 %v1563_v56, %v695_v7  ;;  %v1139_v14 = vpop.f32.mrf.mxu1  ;;  %v1153_v15 = vpop.f32.mrf.mxu0 }
 0x1e1   : > { %583 = vst [vmem:[%s1553_s17 + $0x38] sm:$0xff] %v567_v10  ;;  %v565_v16 = vadd.f32 %v1548_v42, %v547_v11  ;;  %v552_v17 = vmul.f32 %v1139_v14, %v1546_v40  ;;  %v711_v18 = vadd.f32 %v1563_v56, %v693_v13  ;;  %v698_v19 = vmul.f32 %v1153_v15, %v1558_v51 }
 0x1e2   : > { %1037 = vst [vmem:[%s1553_s17 + $0x98] sm:$0xff] %v713_v12  ;;  %v509_v20 = vpop.f32.mrf.mxu1  ;;  %v642_v21 = vpop.f32.mrf.mxu0 }
 0x1e3   : > { %581 = vst [vmem:[%s1553_s17 + $0x28] sm:$0xff] %v565_v16  ;;  %v570_v22 = vadd.f32 %v1548_v42, %v552_v17  ;;  %v550_v23 = vmul.f32 %v1546_v40, %v509_v20  ;;  %1035 = vst [vmem:[%s1553_s17 + $0x88] sm:$0xff] %v711_v18  ;;  %v716_v24 = vadd.f32 %v1563_v56, %v698_v19 }
 0x1e4   : > { %v696_v25 = vmul.f32 %v1558_v51, %v642_v21  ;;  %v1140_v26 = vpop.f32.mrf.mxu1  ;;  %v1154_v27 = vpop.f32.mrf.mxu0 }
 0x1e5   : > { %586 = vst [vmem:[%s1553_s17 + $0x50] sm:$0xff] %v570_v22  ;;  %v568_v28 = vadd.f32 %v1548_v42, %v550_v23  ;;  %v553_v29 = vmul.f32 %v1140_v26, %v1546_v40  ;;  %1040 = vst [vmem:[%s1553_s17 + $0xb0] sm:$0xff] %v716_v24  ;;  %v699_v31 = vmul.f32 %v1154_v27, %v1558_v51 }
 0x1e6   : > { %v714_v30 = vadd.f32 %v1563_v56, %v696_v25  ;;  %v512_v32 = vpop.f32.mrf.mxu1  ;;  %v645_v33 = vpop.f32.mrf.mxu0 }
 0x1e7   : > { %584 = vst [vmem:[%s1553_s17 + $0x40] sm:$0xff] %v568_v28  ;;  %v571_v34 = vadd.f32 %v1548_v42, %v553_v29  ;;  %v551_v35 = vmul.f32 %v1546_v40, %v512_v32  ;;  %v717_v36 = vadd.f32 %v1563_v56, %v699_v31  ;;  %v697_v37 = vmul.f32 %v1558_v51, %v645_v33 }
 0x1e8   : > { %1038 = vst [vmem:[%s1553_s17 + $0xa0] sm:$0xff] %v714_v30  ;;  %v1143_v38 = vpop.f32.mrf.mxu1  ;;  %v1157_v39 = vpop.f32.mrf.mxu0 }
 0x1e9   : > { %587 = vst [vmem:[%s1553_s17 + $0x58] sm:$0xff] %v571_v34  ;;  %v569_v41 = vadd.f32 %v1548_v42, %v551_v35  ;;  %v556_v43 = vmul.f32 %v1143_v38, %v1546_v40  ;;  %1041 = vst [vmem:[%s1553_s17 + $0xb8] sm:$0xff] %v717_v36  ;;  %v715_v44 = vadd.f32 %v1563_v56, %v697_v37 }
 0x1ea   : > { %v702_v45 = vmul.f32 %v1157_v39, %v1558_v51  ;;  %v525_v46 = vpop.f32.mrf.mxu1  ;;  %v658_v47 = vpop.f32.mrf.mxu0 }
 0x1eb   : > { %585 = vst [vmem:[%s1553_s17 + $0x48] sm:$0xff] %v569_v41  ;;  %v574_v48 = vadd.f32 %v1548_v42, %v556_v43  ;;  %v554_v49 = vmul.f32 %v1546_v40, %v525_v46  ;;  %1039 = vst [vmem:[%s1553_s17 + $0xa8] sm:$0xff] %v715_v44  ;;  %v700_v52 = vmul.f32 %v1558_v51, %v658_v47 }
 0x1ec   : > { %v720_v50 = vadd.f32 %v1563_v56, %v702_v45  ;;  %v1144_v53 = vpop.f32.mrf.mxu1  ;;  %v1158_v54 = vpop.f32.mrf.mxu0 }
 0x1ed   : > { %590 = vst [vmem:[%s1553_s17 + $0x70] sm:$0xff] %v574_v48  ;;  %v572_v55 = vadd.f32 %v1548_v42, %v554_v49  ;;  %v557_v57 = vmul.f32 %v1144_v53, %v1546_v40  ;;  %v718_v58 = vadd.f32 %v1563_v56, %v700_v52  ;;  %v703_v59 = vmul.f32 %v1158_v54, %v1558_v51 }
 0x1ee   : > { %1044 = vst [vmem:[%s1553_s17 + $0xd0] sm:$0xff] %v720_v50  ;;  %v528_v60 = vpop.f32.mrf.mxu1  ;;  %v661_v62 = vpop.f32.mrf.mxu0 }
 0x1ef   : > { %588 = vst [vmem:[%s1553_s17 + $0x60] sm:$0xff] %v572_v55  ;;  %v575_v63 = vadd.f32 %v1548_v42, %v557_v57  ;;  %v555_v0 = vmul.f32 %v1546_v40, %v528_v60  ;;  %1042 = vst [vmem:[%s1553_s17 + $0xc0] sm:$0xff] %v718_v58  ;;  %v721_v1 = vadd.f32 %v1563_v56, %v703_v59 }
 0x1f0   : > { %v701_v2 = vmul.f32 %v1558_v51, %v661_v62  ;;  %v1167_v3 = vpop.f32.mrf.mxu1  ;;  %v1161_v5 = vpop.f32.mrf.mxu0 }
 0x1f1   : > { %591 = vst [vmem:[%s1553_s17 + $0x78] sm:$0xff] %v575_v63  ;;  %v573_v6 = vadd.f32 %v1548_v42, %v555_v0  ;;  %v845_v7 = vmul.f32 %v1167_v3, %v1634_v61  ;;  %1045 = vst [vmem:[%s1553_s17 + $0xd8] sm:$0xff] %v721_v1  ;;  %v706_v8 = vmul.f32 %v1161_v5, %v1558_v51 }
 0x1f2   : > { %v719_v40 = vadd.f32 %v1563_v56, %v701_v2  ;;  %v777_v9 = vpop.f32.mrf.mxu1  ;;  %v674_v10 = vpop.f32.mrf.mxu0 }
 0x1f3   : > { %589 = vst [vmem:[%s1553_s17 + $0x68] sm:$0xff] %v573_v6  ;;  %v863_v11 = vadd.f32 %v1643_v4, %v845_v7  ;;  %v843_v12 = vmul.f32 %v1634_v61, %v777_v9  ;;  %v724_v42 = vadd.f32 %v1563_v56, %v706_v8  ;;  %v704_v13 = vmul.f32 %v1558_v51, %v674_v10 }
 0x1f4   : > { %1043 = vst [vmem:[%s1553_s17 + $0xc8] sm:$0xff] %v719_v40  ;;  %v1168_v14 = vpop.f32.mrf.mxu1  ;;  %v1162_v15 = vpop.f32.mrf.mxu0 }
 0x1f5   : > { %1060 = vst [vmem:[%s1553_s17 + $0x110] sm:$0xff] %v863_v11  ;;  %v861_v16 = vadd.f32 %v1643_v4, %v843_v12  ;;  %v846_v17 = vmul.f32 %v1168_v14, %v1634_v61  ;;  %1048 = vst [vmem:[%s1553_s17 + $0xf0] sm:$0xff] %v724_v42  ;;  %v722_v18 = vadd.f32 %v1563_v56, %v704_v13 }
 0x1f6   : > { %v707_v19 = vmul.f32 %v1162_v15, %v1558_v51  ;;  %v780_v20 = vpop.f32.mrf.mxu1  ;;  %v677_v21 = vpop.f32.mrf.mxu0 }
 0x1f7   : > { %1058 = vst [vmem:[%s1553_s17 + $0x100] sm:$0xff] %v861_v16  ;;  %v864_v22 = vadd.f32 %v1643_v4, %v846_v17  ;;  %v844_v23 = vmul.f32 %v1634_v61, %v780_v20  ;;  %1046 = vst [vmem:[%s1553_s17 + $0xe0] sm:$0xff] %v722_v18  ;;  %v705_v25 = vmul.f32 %v1558_v51, %v677_v21 }
 0x1f8   : > { %v725_v24 = vadd.f32 %v1563_v56, %v707_v19  ;;  %v1171_v26 = vpop.f32.mrf.mxu1 }
 0x1f9   : > { %1061 = vst [vmem:[%s1553_s17 + $0x118] sm:$0xff] %v864_v22  ;;  %v862_v27 = vadd.f32 %v1643_v4, %v844_v23  ;;  %v849_v28 = vmul.f32 %v1171_v26, %v1634_v61  ;;  %v723_v29 = vadd.f32 %v1563_v56, %v705_v25 }
 0x1fa   : > { %1049 = vst [vmem:[%s1553_s17 + $0xf8] sm:$0xff] %v725_v24  ;;  %v793_v30 = vpop.f32.mrf.mxu1 }
 0x1fb   : > { %1059 = vst [vmem:[%s1553_s17 + $0x108] sm:$0xff] %v862_v27  ;;  %v867_v31 = vadd.f32 %v1643_v4, %v849_v28  ;;  %v847_v32 = vmul.f32 %v1634_v61, %v793_v30  ;;  %1047 = vst [vmem:[%s1553_s17 + $0xe8] sm:$0xff] %v723_v29 }
 0x1fc   : > { %v1172_v51 = vpop.f32.mrf.mxu1 }
 0x1fd   : > { %1064 = vst [vmem:[%s1553_s17 + $0x130] sm:$0xff] %v867_v31  ;;  %v865_v33 = vadd.f32 %v1643_v4, %v847_v32  ;;  %v850_v34 = vmul.f32 %v1172_v51, %v1634_v61 }
 0x1fe   : > { %v796_v35 = vpop.f32.mrf.mxu1 }
 0x1ff   : > { %1062 = vst [vmem:[%s1553_s17 + $0x120] sm:$0xff] %v865_v33  ;;  %v868_v56 = vadd.f32 %v1643_v4, %v850_v34  ;;  %v848_v36 = vmul.f32 %v1634_v61, %v796_v35 }
 0x200   : > { %v1175_v37 = vpop.f32.mrf.mxu1 }
 0x201   : > { %1065 = vst [vmem:[%s1553_s17 + $0x138] sm:$0xff] %v868_v56  ;;  %v866_v38 = vadd.f32 %v1643_v4, %v848_v36  ;;  %v853_v39 = vmul.f32 %v1175_v37, %v1634_v61 }
 0x202   : > { %v809_v41 = vpop.f32.mrf.mxu1 }
 0x203   : > { %1063 = vst [vmem:[%s1553_s17 + $0x128] sm:$0xff] %v866_v38  ;;  %v871_v43 = vadd.f32 %v1643_v4, %v853_v39  ;;  %v851_v44 = vmul.f32 %v1634_v61, %v809_v41 }
 0x204   : > { %v1176_v45 = vpop.f32.mrf.mxu1 }
 0x205   : > { %1068 = vst [vmem:[%s1553_s17 + $0x150] sm:$0xff] %v871_v43  ;;  %v869_v46 = vadd.f32 %v1643_v4, %v851_v44  ;;  %v854_v47 = vmul.f32 %v1176_v45, %v1634_v61 }
 0x206   : > { %v812_v48 = vpop.f32.mrf.mxu1 }
 0x207   : > { %1066 = vst [vmem:[%s1553_s17 + $0x140] sm:$0xff] %v869_v46  ;;  %v872_v49 = vadd.f32 %v1643_v4, %v854_v47  ;;  %v852_v50 = vmul.f32 %v1634_v61, %v812_v48 }
 0x208   : > { %v1179_v52 = vpop.f32.mrf.mxu1 }
 0x209   : > { %1069 = vst [vmem:[%s1553_s17 + $0x158] sm:$0xff] %v872_v49  ;;  %v870_v53 = vadd.f32 %v1643_v4, %v852_v50  ;;  %v857_v54 = vmul.f32 %v1179_v52, %v1634_v61 }
 0x20a   : > { %v825_v55 = vpop.f32.mrf.mxu1 }
 0x20b   : > { %1067 = vst [vmem:[%s1553_s17 + $0x148] sm:$0xff] %v870_v53  ;;  %v875_v57 = vadd.f32 %v1643_v4, %v857_v54  ;;  %v855_v58 = vmul.f32 %v1634_v61, %v825_v55 }
 0x20c   : > { %v1180_v59 = vpop.f32.mrf.mxu1 }
 0x20d   : > { %1072 = vst [vmem:[%s1553_s17 + $0x170] sm:$0xff] %v875_v57  ;;  %v873_v60 = vadd.f32 %v1643_v4, %v855_v58  ;;  %v858_v62 = vmul.f32 %v1180_v59, %v1634_v61 }
 0x20e   : > { %v828_v63 = vpop.f32.mrf.mxu1 }
 0x20f   : > { %1070 = vst [vmem:[%s1553_s17 + $0x160] sm:$0xff] %v873_v60  ;;  %v876_v0 = vadd.f32 %v1643_v4, %v858_v62  ;;  %v856_v1 = vmul.f32 %v1634_v61, %v828_v63 }
 0x211   : > { %1073 = vst [vmem:[%s1553_s17 + $0x178] sm:$0xff] %v876_v0  ;;  %v874_v2 = vadd.f32 %v1643_v4, %v856_v1 }
 0x213   : > { %1071 = vst [vmem:[%s1553_s17 + $0x168] sm:$0xff] %v874_v2 }
 0x214   : > { %1298 = shalt.err (!%p1295_p1)
}
 0x215   : > { %s1299_s12 = scalar_lea.hbm %s1713_s9, 6144  ;;  %s1303_s17 = scalar_lea.hbm %s1767_s5, 12288 }
 0x216   : > { %p1300_p2 = scmp.ne.s32.totalorder %s1713_s9, %s1299_s12  ;;  %p1304_p9 = scmp.lt.s32.totalorder %s1713_s9, %s1767_s5 }
 0x217   : > { %p1305_p5 = scmp.lt.s32.totalorder %s1303_s17, %s1299_s12 }
 0x218   : > { %p1301_p3 = pnand %p1300_p2, %p1780_p12 }
 0x219   : > { %p1306_p6 = por %p1305_p5, %p1304_p9 }
 0x21a   : > { %p1302_p4 = pneg %p1301_p3 }
 0x21c   : > { %p1307_p10 = pnand %p1306_p6, %p1302_p4 }
 0x21e   : > { %1310 = shalt.err (!%p1307_p10)
}
 0x21f   : > { %s1360_s26 = smov 128   ;;  %s1361_s30 = smov 8  }
 0x220   : > { %1190 = dma.vmem_to_hbm [thread:$0]  (%p1780_p12), %s1715_s6, 6144, %s1713_s9, %s1722_s22, %s1360_s26, %s1360_s26, %s1361_s30  }
 0x221 PF: > { %p1207_p0 = scmp.ge.s32.totalorder %s1353_s21, 2  ;;  %s924_s7 = sand.u32 1, %s1341_s18  }
 0x222   : > { %p1781_p7 = scmp.ne.s32.totalorder %s1772_s29, 0  ;;  %s925_s8 = scalar_lea.sflag [#allocation3], %s924_s7 }
 0x224   : > { %p1200_p8 = pnand %p1207_p0, %p1781_p7 }
 0x226   : > { %p1201_p11 = pneg %p1200_p8 }
 0x228   : > { %1336 = dma.done.wait (%p1201_p11), %s925_s8, 6144  }
 0x229   : > { %1338 = vsyncadd (%p1201_p11), %s925_s8, 4294961152  ;;  %p17_p13 = scmp.ge.s32.totalorder %s1417_s24, 4   ;;  %s1782_s18 = smov %s1345_s19 }
 0x22a   : > { %s1783_s19 = smov %s1349_s20  ;;  %s1784_s20 = smov %s1428_s27 }
 0x22b   : > { %s1785_s21 = smov %s1417_s24  ;;  %19 = sbr.rel (!%p17_p13) target bundleno = 5 (0x5), region = 86 }
 0x230   :  { %930 = vsyncpa [#allocation3], 1 }
 0x231   :  { %932 = vsyncpa [#allocation3 + $0x1], 1 }
 0x232   :  { %933 = vsyncpa [#allocation4], 1 }
 0x233   :  { %935 = vsyncpa [#allocation4 + $0x1], 1 }
 0x234   :  { %936 = vsyncpa [#allocation6], 1 }

</bundles_post_ra>
